<compile_context>
chip_gen: v7x
topology: tpu7x:2x2x1
jax: 0.10.0
libtpu: 0.0.40
codegen_flags: <defaults>
</compile_context>

<pallas_src>
import jax
import jax.numpy as jnp
from jax.experimental import pallas as pl
from jax.experimental.pallas import tpu as pltpu


def _round_up(a, b):
    return ((a + b - 1) // b) * b


def _vmem_budget_bytes():
    """Generation-aware VMEM budget (v5e/v6e: 128 MiB physical, v7x: 64 MiB)."""
    try:
        cap = int(pltpu.get_tpu_info().vmem_capacity_bytes)
    except Exception:
        cap = 64 * 1024 * 1024                      # conservative (v7x) fallback
    # Leave headroom for Mosaic internal scratch; never ask for more than ~100 MiB.
    return min(int(cap * 0.75), 100 * 1024 * 1024)


def _select_tiles(M, Ck_p, Cout_p, sub, c_isz, o_isz, budget):
    """Pick (tm, tn): keep num_n == 1 whenever the tiles fit VMEM, shrinking tm
    first; only split the N (Cout) axis as a last resort, since every extra N
    pass would re-stream the whole patch slab from HBM."""
    Ck_lanes = _round_up(Ck_p, 128)                 # lane-rounded LHS footprint
    Ck_sub = _round_up(Ck_p, 16)                    # sublane-rounded RHS footprint
    M_al = _round_up(M, sub)

    def footprint(tm, tn):
        return 2 * (tm * Ck_lanes * c_isz           # patch tile (double-buffered)
                    + Ck_sub * tn * c_isz           # weight tile
                    + 8 * tn * 4                    # bias tile (f32, sublane-padded)
                    + tm * tn * o_isz)              # output tile

    tm_cands = [min(_round_up(t, sub), M_al) for t in (2048, 1024, 512, 256, 128, 64)]
    # tn must be a lane-dense (x128) divisor of Cout_p; largest first (num_n == 1).
    tn_cands = [d for d in range(Cout_p, 0, -128) if Cout_p % d == 0]

    for tn in tn_cands:
        for tm in tm_cands:
            fp = footprint(tm, tn)
            if fp <= budget:
                return tm, tn, fp
    tm, tn = tm_cands[-1], tn_cands[-1]             # extreme shapes: smallest tiles
    return tm, tn, footprint(tm, tn)


def _conv_matmul_kernel(a_ref, w_ref, b_ref, o_ref):
    # a_ref: (tm, Ck_p)  im2col patch tile (bf16 or f32)
    # w_ref: (Ck_p, tn)  flattened conv-weight tile (bf16 or f32)
    # b_ref: (1, tn)     bias tile (f32)
    # o_ref: (tm, tn)    output tile, lane-dense (tn % 128 == 0)
    acc = jnp.dot(a_ref[...], w_ref[...], preferred_element_type=jnp.float32)
    o_ref[...] = (acc + b_ref[...]).astype(o_ref.dtype)


def conv_embed_forward(x, weight, bias, *, patch_size, stride, padding,
                       compute_dtype=jnp.bfloat16, out_dtype=None):
    """ConvEmbed.forward for a 4D NCHW input (default norm_layer=None)."""
    B, Cin, H, W = x.shape
    Cout = weight.shape[0]
    K, S, P = patch_size, stride, padding
    Ho = (H + 2 * P - K) // S + 1
    Wo = (W + 2 * P - K) // S + 1
    M = B * Ho * Wo
    Ck = Cin * K * K

    cdt = jnp.dtype(compute_dtype)
    odt = jnp.dtype(out_dtype) if out_dtype is not None else jnp.dtype(x.dtype)
    sub = 16 if cdt.itemsize == 2 else 8            # sublane packing minimum

    Ck_p = _round_up(Ck, sub)                       # sublane-align contraction dim
    Cout_p = _round_up(Cout, 128)                   # lane-dense output / RHS

    c_isz = cdt.itemsize
    o_isz = odt.itemsize
    budget = _vmem_budget_bytes()
    tm, tn, vmem_fp = _select_tiles(M, Ck_p, Cout_p, sub, c_isz, o_isz, budget)

    # --- im2col: one fused XLA pass (bf16 default halves the slab traffic) ----
    # Patches are built directly in (b, ho, wo, kh, kw, cin)-flattened order so
    # the final reshape is contiguous; the tiny weight is re-ordered to match.
    xp = jnp.pad(x, ((0, 0), (0, 0), (P, P), (P, P)))
    x_nhwc = jnp.transpose(xp, (0, 2, 3, 1)).astype(cdt)        # (B, Hp, Wp, Cin)
    slices = []
    for i in range(K):
        for j in range(K):
            slices.append(x_nhwc[:, i:i + S * (Ho - 1) + 1:S,
                                 j:j + S * (Wo - 1) + 1:S, :])  # (B, Ho, Wo, Cin)
    if Ck_p != Ck:
        slices.append(jnp.zeros((B, Ho, Wo, Ck_p - Ck), dtype=cdt))
    patches = jnp.concatenate(slices, axis=-1).reshape(M, Ck_p)

    # Weight (Cout, Cin, K, K) -> (K, K, Cin, Cout) -> (Ck, Cout): matches the
    # (kh, kw, cin) flattening above. Zero-pad to (Ck_p, Cout_p). Bias stays f32.
    w_mat = jnp.transpose(weight, (2, 3, 1, 0)).reshape(Ck, Cout).astype(cdt)
    w_mat = jnp.pad(w_mat, ((0, Ck_p - Ck), (0, Cout_p - Cout)))
    b_mat = jnp.pad(bias.astype(jnp.float32), (0, Cout_p - Cout)).reshape(1, Cout_p)

    # --- Pallas matmul (the conv hot path) ------------------------------------
    num_m = pl.cdiv(M, tm)                          # ragged last block masked by Pallas
    num_n = Cout_p // tn                            # tn divides Cout_p by construction

    cost = pl.CostEstimate(
        flops=2 * M * Ck_p * Cout_p,
        transcendentals=0,
        bytes_accessed=(M * Ck_p * c_isz + Ck_p * Cout_p * c_isz
                        + M * Cout_p * o_isz),
    )

    cp_kwargs = dict(dimension_semantics=("parallel", "parallel"))
    if vmem_fp > 12 * 1024 * 1024:
        cp_kwargs["vmem_limit_bytes"] = min(int(vmem_fp) + (4 << 20), budget)

    out = pl.pallas_call(
        _conv_matmul_kernel,
        out_shape=jax.ShapeDtypeStruct((M, Cout_p), odt),
        # M axis leading: patch tile streamed exactly once (never re-read per N
        # pass) and the leading "parallel" axis is shardable across v7x's 2 TCs.
        grid=(num_m, num_n),
        in_specs=[
            pl.BlockSpec((tm, Ck_p), lambda m, n: (m, 0)),      # patch tile
            pl.BlockSpec((Ck_p, tn), lambda m, n: (0, n)),      # weight tile
            pl.BlockSpec((1, tn), lambda m, n: (0, n)),         # bias tile
        ],
        out_specs=pl.BlockSpec((tm, tn), lambda m, n: (m, n)),
        compiler_params=pltpu.CompilerParams(**cp_kwargs),
        cost_estimate=cost,
    )(patches, w_mat, b_mat)

    if Cout_p != Cout:
        out = out[:, :Cout]                         # skipped when already lane-dense
    out = out.reshape(B, Ho * Wo, Cout)             # 'b c h w -> b (h w) c'
    return out, (Ho, Wo)


def _reference_conv(x, weight, bias, *, stride, padding):
    y = jax.lax.conv_general_dilated(
        x, weight,
        window_strides=(stride, stride),
        padding=((padding, padding), (padding, padding)),
        dimension_numbers=("NCHW", "OIHW", "NCHW"))
    y = y + bias[None, :, None, None]
    B, C, Ho, Wo = y.shape
    return y.reshape(B, C, Ho * Wo).transpose(0, 2, 1), (Ho, Wo)


if __name__ == "__main__":
    # ConvEmbed defaults: patch_size=7, in_chans=3, embed_dim=64, stride=4, padding=2
    patch_size, in_chans, embed_dim, stride, padding = 7, 3, 64, 4, 2

    key = jax.random.PRNGKey(0)
    kx, kw, kb = jax.random.split(key, 3)

    x = jax.random.normal(kx, (2, in_chans, 16, 16), dtype=jnp.float32)

    fan_in = in_chans * patch_size * patch_size
    bound = 1.0 / (fan_in ** 0.5)
    weight = jax.random.uniform(kw, (embed_dim, in_chans, patch_size, patch_size),
                                minval=-bound, maxval=bound, dtype=jnp.float32)
    bias = jax.random.uniform(kb, (embed_dim,), minval=-bound, maxval=bound,
                              dtype=jnp.float32)

    ref, (Hr, Wr) = _reference_conv(x, weight, bias, stride=stride, padding=padding)

    # Default path: bf16 MXU operands, f32 accumulate (norm-relative check).
    out_bf, (Ho, Wo) = conv_embed_forward(
        x, weight, bias, patch_size=patch_size, stride=stride, padding=padding)
    out_bf = jax.block_until_ready(out_bf)
    assert out_bf.shape == ref.shape == (2, Ho * Wo, embed_dim)
    assert (Ho, Wo) == (Hr, Wr)
    rel = jnp.linalg.norm(out_bf.astype(jnp.float32) - ref) / jnp.linalg.norm(ref)
    assert float(rel) < 2e-2

    # f32 compute path (tight check) for precision-sensitive stages.
    out_f32, _ = conv_embed_forward(
        x, weight, bias, patch_size=patch_size, stride=stride, padding=padding,
        compute_dtype=jnp.float32)
    out_f32 = jax.block_until_ready(out_f32)
    assert jnp.allclose(out_f32, ref, atol=1e-3, rtol=1e-3)

    print("KERNEL_OK")
</pallas_src>

<mosaic_0001>
module attributes {stable_mosaic.version = 11 : i64} {
  func.func @_conv_matmul_kernel(%arg0: i32, %arg1: i32, %arg2: memref<32x160xbf16, #tpu.memory_space<vmem>>, %arg3: memref<160x128xbf16, #tpu.memory_space<vmem>>, %arg4: memref<1x128xf32, #tpu.memory_space<vmem>>, %arg5: memref<32x128xf32, #tpu.memory_space<vmem>>) attributes {dimension_semantics = [#tpu.dimension_semantics<parallel>, #tpu.dimension_semantics<parallel>], iteration_bounds = array<i64: 1, 1>, scalar_prefetch = 0 : i64, scratch_operands = 0 : i64, tpu.core_type = #tpu.core_type<tc>, window_params = [{transform_indices = @transform_0, window_bounds = array<i64: 32, 160>}, {transform_indices = @transform_1, window_bounds = array<i64: 160, 128>}, {transform_indices = @transform_2, window_bounds = array<i64: 1, 128>}, {transform_indices = @transform_3, window_bounds = array<i64: 32, 128>}]} {
    %c0 = arith.constant 0 : index
    %c0_0 = arith.constant 0 : index
    %0 = vector.load %arg2[%c0, %c0_0] : memref<32x160xbf16, #tpu.memory_space<vmem>>, vector<32x160xbf16>
    %c0_1 = arith.constant 0 : index
    %c0_2 = arith.constant 0 : index
    %1 = vector.load %arg3[%c0_1, %c0_2] : memref<160x128xbf16, #tpu.memory_space<vmem>>, vector<160x128xbf16>
    %cst = arith.constant dense<0.000000e+00> : vector<32x128xf32>
    %2 = tpu.matmul %0, %1, %cst {dimension_numbers = #tpu.dot_dimension_numbers<[1], [0], [0], [1], [0, 0, 1, 1], [], []>} : vector<32x160xbf16>, vector<160x128xbf16>, vector<32x128xf32> -> vector<32x128xf32>
    %c0_3 = arith.constant 0 : index
    %c0_4 = arith.constant 0 : index
    %3 = vector.load %arg4[%c0_3, %c0_4] : memref<1x128xf32, #tpu.memory_space<vmem>>, vector<1x128xf32>
    %4 = vector.broadcast %3 : vector<1x128xf32> to vector<32x128xf32>
    %5 = arith.addf %2, %4 : vector<32x128xf32>
    %c0_5 = arith.constant 0 : index
    %c0_6 = arith.constant 0 : index
    %6 = vector.load %arg5[%c0_5, %c0_6] : memref<32x128xf32, #tpu.memory_space<vmem>>, vector<32x128xf32>
    tpu.vector_store %arg5[%c0_5, %c0_6], %5 {strides = array<i32>} : memref<32x128xf32, #tpu.memory_space<vmem>>, vector<32x128xf32>,
    return
  }
  func.func @transform_0(%arg0: i32, %arg1: i32) -> (i32, i32) {
    %c0_i32 = arith.constant 0 : i32
    %c0_i32_0 = arith.constant 0 : i32
    return %arg0, %c0_i32 : i32, i32
  }
  func.func @transform_1(%arg0: i32, %arg1: i32) -> (i32, i32) {
    %c0_i32 = arith.constant 0 : i32
    %c0_i32_0 = arith.constant 0 : i32
    return %c0_i32, %arg1 : i32, i32
  }
  func.func @transform_2(%arg0: i32, %arg1: i32) -> (i32, i32) {
    %c0_i32 = arith.constant 0 : i32
    %c0_i32_0 = arith.constant 0 : i32
    return %c0_i32, %arg1 : i32, i32
  }
  func.func @transform_3(%arg0: i32, %arg1: i32) -> (i32, i32) {
    %c0_i32 = arith.constant 0 : i32
    return %arg0, %arg1 : i32, i32
  }
}

</mosaic_0001>

<bundles_post_ra>
// kernel: tpu_custom_call.1
= control target key start
LH: loop header
LB: loop body
LE: loop exit
PB: predicated region body
PF: predicated region fallthrough
CT: control target
= control target key end

     0   :  { %8 = vsyncpa [#allocation3], 0  ;;  %s437_s0 = inlined_call_operand.hbm [shape: bf16[32,160], index: 0, kind: input, shape index: {}]   ;;  %s438_s1 = inlined_call_operand.hbm [shape: bf16[160,128], index: 1, kind: input, shape index: {}]   ;;  %s439_s2 = inlined_call_operand.vmem [shape: f32[1,128], index: 2, kind: input, shape index: {}]   ;;  %s440_s3 = inlined_call_operand.hbm [shape: f32[32,128], index: 3, kind: output, shape index: {}]  }
   0x1   :  { %9 = vsyncpa [#allocation6], 0 }
   0x2   :  { %10 = vsyncpa [#allocation4], 0  ;;  %s364_s12 = smov [#allocation2]   ;;  %s292_s16 = scalar_lea.hbm %s437_s0, 512 }
   0x3   :  { %s16_s13 = sshll.u32 %s364_s12, 4  ;;  %p293_p0 = scmp.ne.s32.totalorder %s437_s0, %s292_s16  ;;  %s17_s13 = int_to_ptr.vmem [resolvable:$true] %s16_s13 }
   0x4   :  { %p296_p1 = scmp.lt.u32.totalorder %s292_s16, %s437_s0 }
   0x6   :  { %p298_p2 = pnand %p296_p1, %p293_p0 }
   0x8   :  { %301 = shalt.err (!%p298_p2)
}
   0x9   :  { %s302_s21 = scalar_lea.vmem %s17_s13, 512  ;;  %p307_p4 = scmp.lt.s32.totalorder %s17_s13, %s17_s13 }
   0xa   :  { %p303_p3 = scmp.ne.s32.totalorder %s17_s13, %s302_s21  ;;  %p308_p5 = scmp.lt.s32.totalorder %s302_s21, %s302_s21 }
   0xc   :  { %p309_p6 = por %p308_p5, %p307_p4 }
   0xe   :  { %p310_p7 = pnand %p309_p6, %p303_p3 }
  0x10   :  { %313 = shalt.err (!%p310_p7)
}
  0x11   :  { %s365_s22 = smov 128   ;;  %s366_s23 = smov 8  }
  0x12   :  { %22 = dma.hbm_to_vmem [thread:$0]  %s437_s0, 512, %s17_s13, [#allocation3], %s365_s22, %s365_s22, %s366_s23  }
  0x13   :  { %s367_s26 = smov [#allocation5]   ;;  %s314_s30 = scalar_lea.hbm %s438_s1, 1280 }
  0x14   :  { %s28_s27 = sshll.u32 %s367_s26, 4  ;;  %p315_p8 = scmp.ne.s32.totalorder %s438_s1, %s314_s30  ;;  %s29_s27 = int_to_ptr.vmem [resolvable:$true] %s28_s27 }
  0x15   :  { %p318_p9 = scmp.lt.u32.totalorder %s314_s30, %s438_s1 }
  0x17   :  { %p320_p10 = pnand %p318_p9, %p315_p8 }
  0x19   :  { %323 = shalt.err (!%p320_p10)
}
  0x1a   :  { %s324_s8 = scalar_lea.vmem %s29_s27, 1280  ;;  %p329_p12 = scmp.lt.s32.totalorder %s29_s27, %s29_s27 }
  0x1b   :  { %p325_p11 = scmp.ne.s32.totalorder %s29_s27, %s324_s8  ;;  %p330_p13 = scmp.lt.s32.totalorder %s324_s8, %s324_s8 }
  0x1d   :  { %p331_p0 = por %p330_p13, %p329_p12 }
  0x1f   :  { %p332_p1 = pnand %p331_p0, %p325_p11 }
  0x21   :  { %335 = shalt.err (!%p332_p1)
}
  0x22   :  { %s368_s0 = smov 64   ;;  %s369_s9 = smov 4  }
  0x23   :  { %34 = dma.hbm_to_vmem [thread:$0]  %s438_s1, 1280, %s29_s27, [#allocation6], %s368_s0, %s368_s0, %s369_s9  }
  0x24   :  { %358 = dma.done.wait [#allocation3], 512  }
  0x25   :  { %359 = vsyncadd [#allocation3], 4294966784 }
  0x26   :  { %360 = dma.done.wait [#allocation6], 1280  }
  0x27   :  { %361 = vsyncadd [#allocation6], 4294966016  ;;  %v370_v0 = vmov 0   ;;  %v276_v1 = vld [vmem:[#allocation5] sm:$0xff]   ;;  %v277_v2 = vld [vmem:[#allocation5 + $0x8] sm:$0xff]   ;;  %vm153_vm0 = vcmask 261120  }
  0x28   :  { %160 = vmatprep.subr.bf16.mxu0 %v370_v0  ;;  %248 = vmatprep.subr.bf16.mxu1 %v370_v0  ;;  %v278_v3 = vld [vmem:[#allocation5 + $0x10] sm:$0xff]   ;;  %v279_v4 = vld [vmem:[#allocation5 + $0x18] sm:$0xff]   ;;  %v288_v5 = vld [vmem:[#allocation2 + $0x4] ss:$8 sps:$4 sm:$0xff]   ;;  %s371_s13 = smov [#allocation7]  }
  0x29   :  { %161 = vmatpush1.bf16.msra.mxu0 %v276_v1  ;;  %258 = vmatpush1.bf16.msra.mxu1 %v276_v1  ;;  %v291_v6 = vld [vmem:[#allocation2 + $0x14] ss:$8 sps:$4 sm:$0xff]   ;;  %v280_v7 = vld [vmem:[#allocation5 + $0x20] sm:$0xff]   ;;  %v281_v8 = vld [vmem:[#allocation5 + $0x28] sm:$0xff]   ;;  %s218_s14 = sshll.u32 %s371_s13, 4  ;;  %s219_s14 = int_to_ptr.vmem [resolvable:$true] %s218_s14 }
  0x2a   :  { %162 = vmatprep.subr.bf16.mxu0 %v370_v0  ;;  %249 = vmatprep.subr.bf16.mxu1 %v370_v0  ;;  %v282_v9 = vld [vmem:[#allocation5 + $0x30] sm:$0xff]   ;;  %v283_v10 = vld [vmem:[#allocation5 + $0x38] sm:$0xff]   ;;  %v284_v11 = vld [vmem:[#allocation5 + $0x40] sm:$0xff]   ;;  %p341_p3 = scmp.lt.s32.totalorder %s219_s14, %s219_s14 }
  0x2b   :  { %246 = vmatprep.mubr.msk.bf16.mxu0 %vm153_vm0, %v288_v5  ;;  %247 = vmatprep.mubr.msk.bf16.mxu1 %vm153_vm0, %v291_v6  ;;  %v285_v12 = vld [vmem:[#allocation5 + $0x48] sm:$0xff]   ;;  %v289_v14 = vld [vmem:[#allocation2 + $0x10] ss:$8 sps:$4 sm:$0xff]   ;;  %v231_v15 = vld [vmem:[%s439_s2] ss:$0 sm:$0xff]  ;;  %s336_s2 = scalar_lea.vmem %s219_s14, 512 }
  0x2c   :  { %v286_v13 = vld [vmem:[#allocation2] ss:$8 sps:$4 sm:$0xff]   ;;  %p337_p2 = scmp.ne.s32.totalorder %s219_s14, %s336_s2  ;;  %p342_p4 = scmp.lt.s32.totalorder %s336_s2, %s336_s2 }
  0x2d   :  { %163 = vmatpush1.bf16.msra.mxu0 %v277_v2  ;;  %259 = vmatpush1.bf16.msra.mxu1 %v277_v2 }
  0x2e   :  { %164 = vmatprep.subr.bf16.mxu0 %v370_v0  ;;  %250 = vmatprep.subr.bf16.mxu1 %v370_v0  ;;  %p343_p5 = por %p342_p4, %p341_p3 }
  0x30   :  { %p344_p6 = pnand %p343_p5, %p337_p2 }
  0x31   :  { %165 = vmatpush1.bf16.msra.mxu0 %v278_v3  ;;  %260 = vmatpush1.bf16.msra.mxu1 %v278_v3 }
  0x32   :  { %166 = vmatprep.subr.bf16.mxu0 %v370_v0  ;;  %251 = vmatprep.subr.bf16.mxu1 %v370_v0 }
  0x35   :  { %167 = vmatpush1.bf16.msra.mxu0 %v279_v4  ;;  %261 = vmatpush1.bf16.msra.mxu1 %v279_v4 }
  0x36   :  { %168 = vmatprep.subr.bf16.mxu0 %v370_v0  ;;  %252 = vmatprep.subr.bf16.mxu1 %v370_v0 }
  0x39   :  { %169 = vmatpush1.bf16.msra.mxu0 %v280_v7  ;;  %262 = vmatpush1.bf16.msra.mxu1 %v280_v7 }
  0x3a   :  { %170 = vmatprep.subr.bf16.mxu0 %v370_v0  ;;  %253 = vmatprep.subr.bf16.mxu1 %v370_v0 }
  0x3d   :  { %171 = vmatpush1.bf16.msra.mxu0 %v281_v8  ;;  %263 = vmatpush1.bf16.msra.mxu1 %v281_v8 }
  0x3e   :  { %172 = vmatprep.subr.bf16.mxu0 %v370_v0  ;;  %254 = vmatprep.subr.bf16.mxu1 %v370_v0 }
  0x41   :  { %173 = vmatpush1.bf16.msra.mxu0 %v282_v9  ;;  %264 = vmatpush1.bf16.msra.mxu1 %v282_v9 }
  0x42   :  { %174 = vmatprep.subr.bf16.mxu0 %v370_v0  ;;  %255 = vmatprep.subr.bf16.mxu1 %v370_v0 }
  0x45   :  { %175 = vmatpush1.bf16.msra.mxu0 %v283_v10  ;;  %265 = vmatpush1.bf16.msra.mxu1 %v283_v10 }
  0x46   :  { %176 = vmatprep.subr.bf16.mxu0 %v370_v0  ;;  %256 = vmatprep.subr.bf16.mxu1 %v370_v0 }
  0x49   :  { %177 = vmatpush1.bf16.msra.mxu0 %v284_v11  ;;  %266 = vmatpush1.bf16.msra.mxu1 %v284_v11 }
  0x4a   :  { %178 = vmatprep.subr.bf16.mxu0 %v370_v0  ;;  %257 = vmatprep.subr.bf16.mxu1 %v370_v0 }
  0x4d   :  { %179 = vmatpush1.bf16.msra.mxu0 %v285_v12  ;;  %267 = vmatpush1.bf16.msra.mxu1 %v285_v12 }
  0x50   :  { %193 = vmatmul.mubr.bf16.vlgmr.msra.gmra.mrb[0].mxu0 %v286_v13  ;;  %201 = vmatmul.mubr.bf16.vlgmr.msra.gmra.mrb[0].mxu1 %v289_v14 }
 0x123   :  { %v194_v16 = vpop.f32.mrb[0].mxu0  ;;  %v202_v17 = vpop.f32.mrb[0].mxu1 }
 0x124   :  { %v195_v18 = vadd.f32 %v231_v15, %v194_v16  ;;  %v203_v19 = vadd.f32 %v231_v15, %v202_v17  ;;  %v196_v20 = vpop.f32.mrb[1].mxu0  ;;  %v204_v21 = vpop.f32.mrb[1].mxu1 }
 0x125   :  { %v197_v22 = vpop.f32.mrb[2].mxu0  ;;  %v205_v23 = vpop.f32.mrb[2].mxu1 }
 0x126   :  { %209 = vst [vmem:[#allocation7] sm:$0xff] %v195_v18  ;;  %211 = vst [vmem:[#allocation7 + $0x10] sm:$0xff] %v203_v19  ;;  %v198_v24 = vadd.f32 %v231_v15, %v197_v22  ;;  %v206_v25 = vadd.f32 %v231_v15, %v205_v23  ;;  %v199_v26 = vpop.f32.mrb[3].mxu0  ;;  %v207_v27 = vpop.f32.mrb[3].mxu1 }
 0x128   :  { %210 = vst [vmem:[#allocation7 + $0x8] sm:$0xff] %v198_v24  ;;  %212 = vst [vmem:[#allocation7 + $0x18] sm:$0xff] %v206_v25 }
 0x129   :  { %347 = shalt.err (!%p344_p6)
}
 0x12a   :  { %s348_s17 = scalar_lea.hbm %s440_s3, 512 }
 0x12b   :  { %p349_p7 = scmp.ne.s32.totalorder %s440_s3, %s348_s17  ;;  %p352_p8 = scmp.lt.u32.totalorder %s348_s17, %s440_s3 }
 0x12d   :  { %p354_p9 = pnand %p352_p8, %p349_p7 }
 0x12f   :  { %357 = shalt.err (!%p354_p9)
}
 0x130   :  { %224 = dma.vmem_to_hbm [thread:$0]  %s219_s14, 512, %s440_s3, [#allocation4], %s365_s22, %s365_s22, %s366_s23  }
 0x131   :  { %362 = dma.done.wait [#allocation4], 512  }
 0x132   :  { %363 = vsyncadd [#allocation4], 4294966784 }
 0x133   :  { %228 = vsyncpa [#allocation3], 1 }
 0x134   :  { %229 = vsyncpa [#allocation6], 1 }
 0x135   :  { %230 = vsyncpa [#allocation4], 1 }

</bundles_post_ra>
